<compile_context>
chip_gen: v7x
topology: tpu7x:2x2x1
jax: 0.10.0
libtpu: 0.0.40
codegen_flags: <defaults>
</compile_context>

<pallas_src>
import jax
import jax.numpy as jnp
from jax.experimental import pallas as pl
from jax.experimental.pallas import tpu as pltpu

HIDDEN = 256
LANE = 128


def _round_up(n, m):
    return ((n + m - 1) // m) * m


def _layer1_vpu(x, w1):
    """Unrolled K-small linear: sum_k x[:, k:k+1] * w1[k:k+1, :] on the VPU (f32)."""
    h = x[:, 0:1] * w1[0:1, :]
    for k in range(1, x.shape[1]):
        h = h + x[:, k : k + 1] * w1[k : k + 1, :]
    return h


def dqn_mlp_kernel(x_ref, w1_ref, b1_ref, w2_ref, b2_ref, w3_ref, b3_ref, o_ref):
    # Layer 1: tiny-K linear on the VPU (f32), ReLU epilogue.
    h = _layer1_vpu(x_ref[...], w1_ref[...])
    h = jnp.maximum(h + b1_ref[...], 0.0)
    # Layer 2: MXU matmul, bf16 operands, f32 accumulation, f32 bias/ReLU.
    h = jnp.dot(h.astype(jnp.bfloat16), w2_ref[...],
                preferred_element_type=jnp.float32)
    h = jnp.maximum(h + b2_ref[...], 0.0)
    # Layer 3: MXU matmul (lane-padded Q head), no activation.
    q = jnp.dot(h.astype(jnp.bfloat16), w3_ref[...],
                preferred_element_type=jnp.float32)
    o_ref[...] = (q + b3_ref[...]).astype(o_ref.dtype)


def dqn_forward(x, params, *, block_b=512):
    """Fused 3-layer DQN MLP on TPU via a single Pallas kernel.

    x: (B, input_dim) float32
    params: dict with f32 w1 (in,256), b1 (1,256), w2 (256,256), b2 (1,256),
            w3 (256,out), b3 (1,out).  w2/w3 are downcast to bf16 here.
    block_b: max batch rows per grid step (weights stay VMEM-resident).
    """
    B, in_dim = x.shape
    out_dim = params["w3"].shape[1]

    # Layer-1 operands stay f32 (VPU path, tiny DMA); MXU layers get bf16 weights.
    w1 = params["w1"].astype(jnp.float32)
    b1 = params["b1"].astype(jnp.float32)
    w2 = params["w2"].astype(jnp.bfloat16)
    b2 = params["b2"].astype(jnp.float32)
    w3 = params["w3"].astype(jnp.bfloat16)
    b3 = params["b3"].astype(jnp.float32)

    # Lane-dense output head: pad to a full 128-lane register (zeros), slice later.
    out_pad = _round_up(out_dim, LANE)
    if out_pad != out_dim:
        w3 = jnp.pad(w3, ((0, 0), (0, out_pad - out_dim)))
        b3 = jnp.pad(b3, ((0, 0), (0, out_pad - out_dim)))

    # Equal-tile batch split; even tile count (when >1) balances v7x's two TCs.
    n_tiles = pl.cdiv(B, block_b)
    if n_tiles > 1:
        n_tiles = _round_up(n_tiles, 2)
    tb = _round_up(pl.cdiv(B, n_tiles), 8)
    b_pad = n_tiles * tb
    if b_pad != B:
        x = jnp.pad(x, ((0, b_pad - B), (0, 0)))
    grid = (n_tiles,)

    # Weights/biases: same block every grid step -> VMEM-resident, DMA'd once.
    def resident(arr):
        return pl.BlockSpec(arr.shape, lambda i: (0, 0))

    flops = 2 * b_pad * (in_dim * HIDDEN + HIDDEN * HIDDEN + HIDDEN * out_pad)
    bytes_accessed = (
        b_pad * in_dim * 4                      # x
        + in_dim * HIDDEN * 4 + HIDDEN * 4      # w1, b1 (f32)
        + HIDDEN * HIDDEN * 2 + HIDDEN * 4      # w2 (bf16), b2
        + HIDDEN * out_pad * 2 + out_pad * 4    # w3 (bf16), b3
        + b_pad * out_pad * 4                   # padded output
    )

    q = pl.pallas_call(
        dqn_mlp_kernel,
        out_shape=jax.ShapeDtypeStruct((b_pad, out_pad), jnp.float32),
        grid=grid,
        in_specs=[
            pl.BlockSpec((tb, in_dim), lambda i: (i, 0)),   # streamed batch tile
            resident(w1), resident(b1),
            resident(w2), resident(b2),
            resident(w3), resident(b3),
        ],
        out_specs=pl.BlockSpec((tb, out_pad), lambda i: (i, 0)),
        compiler_params=pltpu.CompilerParams(
            dimension_semantics=("parallel",)),
        cost_estimate=pl.CostEstimate(
            flops=int(flops), transcendentals=0,
            bytes_accessed=int(bytes_accessed)),
    )(x, w1, b1, w2, b2, w3, b3)

    return q[:B, :out_dim]


def init_params(key, input_dim, hidden, output_dim):
    """Deterministic init mirroring nn.Linear's uniform(-1/sqrt(fan_in), 1/sqrt(fan_in))."""
    ks = jax.random.split(key, 6)

    def lin(kw, kb, fan_in, fan_out):
        bound = 1.0 / jnp.sqrt(jnp.float32(fan_in))
        w = jax.random.uniform(kw, (fan_in, fan_out), jnp.float32, -bound, bound)
        b = jax.random.uniform(kb, (1, fan_out), jnp.float32, -bound, bound)
        return w, b

    w1, b1 = lin(ks[0], ks[1], input_dim, hidden)
    w2, b2 = lin(ks[2], ks[3], hidden, hidden)
    w3, b3 = lin(ks[4], ks[5], hidden, output_dim)
    return {"w1": w1, "b1": b1, "w2": w2, "b2": b2, "w3": w3, "b3": b3}


def dqn_forward_ref_mixed(x, p):
    """Reference mirroring the kernel's precision (f32 VPU layer 1, bf16 MXU layers 2/3)."""
    h = jnp.maximum(_layer1_vpu(x, p["w1"]) + p["b1"], 0.0)
    h = jnp.dot(h.astype(jnp.bfloat16), p["w2"].astype(jnp.bfloat16),
                preferred_element_type=jnp.float32) + p["b2"]
    h = jnp.maximum(h, 0.0)
    return jnp.dot(h.astype(jnp.bfloat16), p["w3"].astype(jnp.bfloat16),
                   preferred_element_type=jnp.float32) + p["b3"]


def dqn_forward_ref_f32(x, p):
    h = jnp.maximum(x @ p["w1"] + p["b1"], 0.0)
    h = jnp.maximum(h @ p["w2"] + p["b2"], 0.0)
    return h @ p["w3"] + p["b3"]


if __name__ == "__main__":
    # CartPole: state dim 4, 2 actions; hidden width 256 as in the module.
    INPUT_DIM, OUTPUT_DIM = 4, 2

    key = jax.random.PRNGKey(0)
    k_params, k_x1, k_x2 = jax.random.split(key, 3)
    params = init_params(k_params, INPUT_DIM, HIDDEN, OUTPUT_DIM)

    # Small action-selection batch (single grid step) and a replay-minibatch
    # sized batch that exercises the equal-tile, TC-balanced batch grid.
    x_small = jax.random.normal(k_x1, (8, INPUT_DIM), jnp.float32)
    x_big = jax.random.normal(k_x2, (512, INPUT_DIM), jnp.float32)

    for x, bb in ((x_small, 512), (x_big, 256)):
        q = jax.block_until_ready(dqn_forward(x, params, block_b=bb))
        assert q.shape == (x.shape[0], OUTPUT_DIM), q.shape

        q_mixed = dqn_forward_ref_mixed(x, params)   # precision-matched reference
        q_f32 = dqn_forward_ref_f32(x, params)       # original f32 module semantics
        assert jnp.allclose(q, q_mixed, atol=2e-3, rtol=2e-3), "mismatch vs precision-matched reference"
        assert jnp.allclose(q, q_f32, atol=5e-2, rtol=5e-2), "mismatch vs f32 reference"

    print("KERNEL_OK")
</pallas_src>

<mosaic_0001>
module attributes {stable_mosaic.version = 11 : i64} {
  func.func @dqn_mlp_kernel(%arg0: i32, %arg1: memref<8x4xf32, #tpu.memory_space<vmem>>, %arg2: memref<4x256xf32, #tpu.memory_space<vmem>>, %arg3: memref<1x256xf32, #tpu.memory_space<vmem>>, %arg4: memref<256x256xbf16, #tpu.memory_space<vmem>>, %arg5: memref<1x256xf32, #tpu.memory_space<vmem>>, %arg6: memref<256x128xbf16, #tpu.memory_space<vmem>>, %arg7: memref<1x128xf32, #tpu.memory_space<vmem>>, %arg8: memref<8x128xf32, #tpu.memory_space<vmem>>) attributes {dimension_semantics = [#tpu.dimension_semantics<parallel>], iteration_bounds = array<i64: 1>, scalar_prefetch = 0 : i64, scratch_operands = 0 : i64, tpu.core_type = #tpu.core_type<tc>, window_params = [{transform_indices = @transform_0, window_bounds = array<i64: 8, 4>}, {pipeline_mode = #tpu.pipeline_mode<synchronous>, transform_indices = @transform_1, window_bounds = array<i64: 4, 256>}, {pipeline_mode = #tpu.pipeline_mode<synchronous>, transform_indices = @transform_2, window_bounds = array<i64: 1, 256>}, {pipeline_mode = #tpu.pipeline_mode<synchronous>, transform_indices = @transform_3, window_bounds = array<i64: 256, 256>}, {pipeline_mode = #tpu.pipeline_mode<synchronous>, transform_indices = @transform_4, window_bounds = array<i64: 1, 256>}, {pipeline_mode = #tpu.pipeline_mode<synchronous>, transform_indices = @transform_5, window_bounds = array<i64: 256, 128>}, {pipeline_mode = #tpu.pipeline_mode<synchronous>, transform_indices = @transform_6, window_bounds = array<i64: 1, 128>}, {transform_indices = @transform_7, window_bounds = array<i64: 8, 128>}]} {
    %c0 = arith.constant 0 : index
    %c0_0 = arith.constant 0 : index
    %0 = vector.load %arg1[%c0, %c0_0] : memref<8x4xf32, #tpu.memory_space<vmem>>, vector<8x4xf32>
    %c0_1 = arith.constant 0 : index
    %c0_2 = arith.constant 0 : index
    %1 = vector.load %arg2[%c0_1, %c0_2] : memref<4x256xf32, #tpu.memory_space<vmem>>, vector<4x256xf32>
    %2 = vector.extract_strided_slice %0 {offsets = [0, 0], sizes = [8, 1], strides = [1, 1]} : vector<8x4xf32> to vector<8x1xf32>
    %3 = vector.extract_strided_slice %1 {offsets = [0, 0], sizes = [1, 256], strides = [1, 1]} : vector<4x256xf32> to vector<1x256xf32>
    %4 = vector.broadcast %2 : vector<8x1xf32> to vector<8x256xf32>
    %5 = vector.broadcast %3 : vector<1x256xf32> to vector<8x256xf32>
    %6 = arith.mulf %4, %5 : vector<8x256xf32>
    %7 = vector.extract_strided_slice %0 {offsets = [0, 1], sizes = [8, 1], strides = [1, 1]} : vector<8x4xf32> to vector<8x1xf32>
    %8 = vector.extract_strided_slice %1 {offsets = [1, 0], sizes = [1, 256], strides = [1, 1]} : vector<4x256xf32> to vector<1x256xf32>
    %9 = vector.broadcast %7 : vector<8x1xf32> to vector<8x256xf32>
    %10 = vector.broadcast %8 : vector<1x256xf32> to vector<8x256xf32>
    %11 = arith.mulf %9, %10 : vector<8x256xf32>
    %12 = arith.addf %6, %11 : vector<8x256xf32>
    %13 = vector.extract_strided_slice %0 {offsets = [0, 2], sizes = [8, 1], strides = [1, 1]} : vector<8x4xf32> to vector<8x1xf32>
    %14 = vector.extract_strided_slice %1 {offsets = [2, 0], sizes = [1, 256], strides = [1, 1]} : vector<4x256xf32> to vector<1x256xf32>
    %15 = vector.broadcast %13 : vector<8x1xf32> to vector<8x256xf32>
    %16 = vector.broadcast %14 : vector<1x256xf32> to vector<8x256xf32>
    %17 = arith.mulf %15, %16 : vector<8x256xf32>
    %18 = arith.addf %12, %17 : vector<8x256xf32>
    %19 = vector.extract_strided_slice %0 {offsets = [0, 3], sizes = [8, 1], strides = [1, 1]} : vector<8x4xf32> to vector<8x1xf32>
    %20 = vector.extract_strided_slice %1 {offsets = [3, 0], sizes = [1, 256], strides = [1, 1]} : vector<4x256xf32> to vector<1x256xf32>
    %21 = vector.broadcast %19 : vector<8x1xf32> to vector<8x256xf32>
    %22 = vector.broadcast %20 : vector<1x256xf32> to vector<8x256xf32>
    %23 = arith.mulf %21, %22 : vector<8x256xf32>
    %24 = arith.addf %18, %23 : vector<8x256xf32>
    %c0_3 = arith.constant 0 : index
    %c0_4 = arith.constant 0 : index
    %25 = vector.load %arg3[%c0_3, %c0_4] : memref<1x256xf32, #tpu.memory_space<vmem>>, vector<1x256xf32>
    %26 = vector.broadcast %25 : vector<1x256xf32> to vector<8x256xf32>
    %27 = arith.addf %24, %26 : vector<8x256xf32>
    %cst = arith.constant 0.000000e+00 : f32
    %28 = vector.broadcast %cst : f32 to vector<8x256xf32>
    %29 = arith.maximumf %27, %28 : vector<8x256xf32>
    %30 = arith.truncf %29 : vector<8x256xf32> to vector<8x256xbf16>
    %c0_5 = arith.constant 0 : index
    %c0_6 = arith.constant 0 : index
    %31 = vector.load %arg4[%c0_5, %c0_6] : memref<256x256xbf16, #tpu.memory_space<vmem>>, vector<256x256xbf16>
    %cst_7 = arith.constant dense<0.000000e+00> : vector<8x256xf32>
    %32 = tpu.matmul %30, %31, %cst_7 {dimension_numbers = #tpu.dot_dimension_numbers<[1], [0], [0], [1], [0, 0, 1, 1], [], []>} : vector<8x256xbf16>, vector<256x256xbf16>, vector<8x256xf32> -> vector<8x256xf32>
    %c0_8 = arith.constant 0 : index
    %c0_9 = arith.constant 0 : index
    %33 = vector.load %arg5[%c0_8, %c0_9] : memref<1x256xf32, #tpu.memory_space<vmem>>, vector<1x256xf32>
    %34 = vector.broadcast %33 : vector<1x256xf32> to vector<8x256xf32>
    %35 = arith.addf %32, %34 : vector<8x256xf32>
    %cst_10 = arith.constant 0.000000e+00 : f32
    %36 = vector.broadcast %cst_10 : f32 to vector<8x256xf32>
    %37 = arith.maximumf %35, %36 : vector<8x256xf32>
    %38 = arith.truncf %37 : vector<8x256xf32> to vector<8x256xbf16>
    %c0_11 = arith.constant 0 : index
    %c0_12 = arith.constant 0 : index
    %39 = vector.load %arg6[%c0_11, %c0_12] : memref<256x128xbf16, #tpu.memory_space<vmem>>, vector<256x128xbf16>
    %cst_13 = arith.constant dense<0.000000e+00> : vector<8x128xf32>
    %40 = tpu.matmul %38, %39, %cst_13 {dimension_numbers = #tpu.dot_dimension_numbers<[1], [0], [0], [1], [0, 0, 1, 1], [], []>} : vector<8x256xbf16>, vector<256x128xbf16>, vector<8x128xf32> -> vector<8x128xf32>
    %c0_14 = arith.constant 0 : index
    %c0_15 = arith.constant 0 : index
    %41 = vector.load %arg7[%c0_14, %c0_15] : memref<1x128xf32, #tpu.memory_space<vmem>>, vector<1x128xf32>
    %42 = vector.broadcast %41 : vector<1x128xf32> to vector<8x128xf32>
    %43 = arith.addf %40, %42 : vector<8x128xf32>
    %c0_16 = arith.constant 0 : index
    %c0_17 = arith.constant 0 : index
    %44 = vector.load %arg8[%c0_16, %c0_17] : memref<8x128xf32, #tpu.memory_space<vmem>>, vector<8x128xf32>
    tpu.vector_store %arg8[%c0_16, %c0_17], %43 {strides = array<i32>} : memref<8x128xf32, #tpu.memory_space<vmem>>, vector<8x128xf32>,
    return
  }
  func.func @transform_0(%arg0: i32) -> (i32, i32) {
    %c0_i32 = arith.constant 0 : i32
    %c0_i32_0 = arith.constant 0 : i32
    return %arg0, %c0_i32 : i32, i32
  }
  func.func @transform_1(%arg0: i32) -> (i32, i32) {
    %c0_i32 = arith.constant 0 : i32
    %c0_i32_0 = arith.constant 0 : i32
    %c0_i32_1 = arith.constant 0 : i32
    return %c0_i32, %c0_i32_0 : i32, i32
  }
  func.func @transform_2(%arg0: i32) -> (i32, i32) {
    %c0_i32 = arith.constant 0 : i32
    %c0_i32_0 = arith.constant 0 : i32
    %c0_i32_1 = arith.constant 0 : i32
    return %c0_i32, %c0_i32_0 : i32, i32
  }
  func.func @transform_3(%arg0: i32) -> (i32, i32) {
    %c0_i32 = arith.constant 0 : i32
    %c0_i32_0 = arith.constant 0 : i32
    %c0_i32_1 = arith.constant 0 : i32
    return %c0_i32, %c0_i32_0 : i32, i32
  }
  func.func @transform_4(%arg0: i32) -> (i32, i32) {
    %c0_i32 = arith.constant 0 : i32
    %c0_i32_0 = arith.constant 0 : i32
    %c0_i32_1 = arith.constant 0 : i32
    return %c0_i32, %c0_i32_0 : i32, i32
  }
  func.func @transform_5(%arg0: i32) -> (i32, i32) {
    %c0_i32 = arith.constant 0 : i32
    %c0_i32_0 = arith.constant 0 : i32
    %c0_i32_1 = arith.constant 0 : i32
    return %c0_i32, %c0_i32_0 : i32, i32
  }
  func.func @transform_6(%arg0: i32) -> (i32, i32) {
    %c0_i32 = arith.constant 0 : i32
    %c0_i32_0 = arith.constant 0 : i32
    %c0_i32_1 = arith.constant 0 : i32
    return %c0_i32, %c0_i32_0 : i32, i32
  }
  func.func @transform_7(%arg0: i32) -> (i32, i32) {
    %c0_i32 = arith.constant 0 : i32
    %c0_i32_0 = arith.constant 0 : i32
    return %arg0, %c0_i32 : i32, i32
  }
}

</mosaic_0001>

<bundles_post_ra>
// kernel: tpu_custom_call.1
= control target key start
LH: loop header
LB: loop body
LE: loop exit
PB: predicated region body
PF: predicated region fallthrough
CT: control target
= control target key end

     0   :  { %12 = vsyncpa [#allocation3], 0  ;;  %s960_s0 = inlined_call_operand.vmem [shape: f32[8,4], index: 0, kind: input, shape index: {}]   ;;  %s961_s1 = inlined_call_operand.vmem [shape: f32[4,256], index: 1, kind: input, shape index: {}]   ;;  %s962_s2 = inlined_call_operand.vmem [shape: f32[1,256], index: 2, kind: input, shape index: {}]   ;;  %s963_s3 = inlined_call_operand.hbm [shape: bf16[256,256], index: 3, kind: input, shape index: {}]   ;;  %s964_s4 = inlined_call_operand.vmem [shape: f32[1,256], index: 4, kind: input, shape index: {}]   ;;  %s965_s5 = inlined_call_operand.hbm [shape: bf16[256,128], index: 5, kind: input, shape index: {}]   ;;  %s966_s6 = inlined_call_operand.vmem [shape: f32[1,128], index: 6, kind: input, shape index: {}]   ;;  %s967_s7 = inlined_call_operand.hbm [shape: f32[8,128], index: 7, kind: output, shape index: {}]  }
   0x1   :  { %13 = vsyncpa [#allocation6], 0 }
   0x2   :  { %14 = vsyncpa [#allocation4], 0  ;;  %s844_s24 = smov [#allocation2]   ;;  %s772_s28 = scalar_lea.hbm %s963_s3, 4096 }
   0x3   :  { %s26_s25 = sshll.u32 %s844_s24, 4  ;;  %p773_p0 = scmp.ne.s32.totalorder %s963_s3, %s772_s28  ;;  %s27_s25 = int_to_ptr.vmem [resolvable:$true] %s26_s25 }
   0x4   :  { %p776_p1 = scmp.lt.u32.totalorder %s772_s28, %s963_s3 }
   0x6   :  { %p778_p2 = pnand %p776_p1, %p773_p0 }
   0x8   :  { %781 = shalt.err (!%p778_p2)
}
   0x9   :  { %s782_s10 = scalar_lea.vmem %s27_s25, 4096  ;;  %p787_p4 = scmp.lt.s32.totalorder %s27_s25, %s27_s25 }
   0xa   :  { %p783_p3 = scmp.ne.s32.totalorder %s27_s25, %s782_s10  ;;  %p788_p5 = scmp.lt.s32.totalorder %s782_s10, %s782_s10 }
   0xc   :  { %p789_p6 = por %p788_p5, %p787_p4 }
   0xe   :  { %p790_p7 = pnand %p789_p6, %p783_p3 }
  0x10   :  { %793 = shalt.err (!%p790_p7)
}
  0x11   :  { %s845_s11 = smov 128   ;;  %s846_s12 = smov 8  }
  0x12   :  { %32 = dma.hbm_to_vmem [thread:$0]  %s963_s3, 4096, %s27_s25, [#allocation3], %s845_s11, %s845_s11, %s846_s12  }
  0x13   :  { %s847_s15 = smov [#allocation5]   ;;  %s794_s19 = scalar_lea.hbm %s965_s5, 2048 }
  0x14   :  { %s40_s16 = sshll.u32 %s847_s15, 4  ;;  %p795_p8 = scmp.ne.s32.totalorder %s965_s5, %s794_s19  ;;  %s41_s16 = int_to_ptr.vmem [resolvable:$true] %s40_s16 }
  0x15   :  { %p798_p9 = scmp.lt.u32.totalorder %s794_s19, %s965_s5 }
  0x17   :  { %p800_p10 = pnand %p798_p9, %p795_p8 }
  0x19   :  { %803 = shalt.err (!%p800_p10)
}
  0x1a   :  { %s804_s24 = scalar_lea.vmem %s41_s16, 2048  ;;  %p809_p12 = scmp.lt.s32.totalorder %s41_s16, %s41_s16 }
  0x1b   :  { %p805_p11 = scmp.ne.s32.totalorder %s41_s16, %s804_s24  ;;  %p810_p13 = scmp.lt.s32.totalorder %s804_s24, %s804_s24 }
  0x1d   :  { %p811_p0 = por %p810_p13, %p809_p12 }
  0x1f   :  { %p812_p1 = pnand %p811_p0, %p805_p11 }
  0x21   :  { %815 = shalt.err (!%p812_p1)
}
  0x22   :  { %s848_s3 = smov 64   ;;  %s849_s25 = smov 4  }
  0x23   :  { %46 = dma.hbm_to_vmem [thread:$0]  %s965_s5, 2048, %s41_s16, [#allocation6], %s848_s3, %s848_s3, %s849_s25  }
  0x24   :  { %838 = dma.done.wait [#allocation3], 4096  }
  0x25   :  { %839 = vsyncadd [#allocation3], 4294963200 }
  0x26   :  { %840 = dma.done.wait [#allocation6], 2048  }
  0x27   :  { %841 = vsyncadd [#allocation6], 4294965248  ;;  %v850_v0 = vmov 0   ;;  %v851_v1 = vmov 2   ;;  %v56_v2 = vld [vmem:[%s960_s0] sm:$0xff]  ;;  %v852_v7 = vmov 1   ;;  %v64_v49 = vlaneseq }
  0x28   :  { %703 = vset.pattern.permute.xlu0 %v850_v0  ;;  %705 = vset.pattern.permute.xlu1 %v851_v1  ;;  %v708_v3 = vld [vmem:[#allocation2 + $0x4] ss:$8 sps:$4 sm:$0xff]   ;;  %v710_v4 = vld [vmem:[#allocation2] ss:$8 sps:$4 sm:$0xff]   ;;  %v711_v5 = vld [vmem:[#allocation2 + $0x14] ss:$8 sps:$4 sm:$0xff]  }
  0x29   :  { %60 = vperm.xlu0 %703, %v56_v2   ;;  %111 = vperm.xlu1 %705, %v56_v2   ;;  %v713_v6 = vld [vmem:[#allocation2 + $0x10] ss:$8 sps:$4 sm:$0xff]   ;;  %v853_v8 = vmov 3   ;;  %v714_v9 = vld [vmem:[#allocation2 + $0x24] ss:$8 sps:$4 sm:$0xff]   ;;  %v65_v50 = vshrl.u32 %v64_v49, 7 }
  0x2a   :  { %384 = vmatprep.subr.bf16.mxu0 %v708_v3  ;;  %v716_v10 = vld [vmem:[#allocation2 + $0x20] ss:$8 sps:$4 sm:$0xff]   ;;  %v717_v11 = vld [vmem:[#allocation2 + $0x34] ss:$8 sps:$4 sm:$0xff]   ;;  %v719_v12 = vld [vmem:[#allocation2 + $0x30] ss:$8 sps:$4 sm:$0xff]  }
  0x2b   :  { %385 = vmatpush1.bf16.msra.mxu0 %v710_v4  ;;  %v720_v13 = vld [vmem:[#allocation2 + $0x44] ss:$8 sps:$4 sm:$0xff]   ;;  %v722_v14 = vld [vmem:[#allocation2 + $0x40] ss:$8 sps:$4 sm:$0xff]   ;;  %v723_v15 = vld [vmem:[#allocation2 + $0x54] ss:$8 sps:$4 sm:$0xff]  }
  0x2c   :  { %386 = vmatprep.subr.bf16.mxu0 %v711_v5  ;;  %v725_v16 = vld [vmem:[#allocation2 + $0x50] ss:$8 sps:$4 sm:$0xff]   ;;  %v726_v17 = vld [vmem:[#allocation2 + $0x64] ss:$8 sps:$4 sm:$0xff]   ;;  %v728_v18 = vld [vmem:[#allocation2 + $0x60] ss:$8 sps:$4 sm:$0xff]  }
  0x2d   :  { %704 = vset.pattern.permute.xlu0 %v852_v7  ;;  %706 = vset.pattern.permute.xlu1 %v853_v8  ;;  %v729_v19 = vld [vmem:[#allocation2 + $0x74] ss:$8 sps:$4 sm:$0xff]   ;;  %v756_v20 = vld [vmem:[#allocation5 + $0x40] sm:$0xff]   ;;  %v758_v22 = vld [vmem:[#allocation5 + $0x48] sm:$0xff]   ;;  %v922_v51 = vsub.s32 0, %v65_v50  ;;  %v70_v52 = vsub.s32 4, %v65_v50 }
  0x2e   :  { %85 = vperm.xlu0 %704, %v56_v2   ;;  %137 = vperm.xlu1 %706, %v56_v2   ;;  %v757_v21 = vld [vmem:[#allocation5] sm:$0xff]   ;;  %v759_v23 = vld [vmem:[#allocation5 + $0x8] sm:$0xff]   ;;  %v760_v24 = vld [vmem:[#allocation5 + $0x50] sm:$0xff]   ;;  %v924_v53 = vsub.s32 1, %v65_v50  ;;  %v94_v54 = vsub.s32 5, %v65_v50  ;;  %v116_v56 = vsub.s32 2, %v65_v50 }
  0x2f   :  { %387 = vmatpush1.bf16.msra.mxu0 %v713_v6  ;;  %670 = vmatprep.subr.bf16.mxu1 %v756_v20  ;;  %v731_v25 = vld [vmem:[#allocation2 + $0x70] ss:$8 sps:$4 sm:$0xff]   ;;  %v732_v26 = vld [vmem:[#allocation2 + $0x84] ss:$8 sps:$4 sm:$0xff]   ;;  %v734_v29 = vld [vmem:[#allocation2 + $0x80] ss:$8 sps:$4 sm:$0xff]  }
  0x30   :  { %388 = vmatprep.subr.bf16.mxu0 %v714_v9  ;;  %671 = vmatpush3.bf16.msra.mxu1 %v757_v21  ;;  %v761_v27 = vld [vmem:[#allocation5 + $0x10] sm:$0xff]   ;;  %v762_v28 = vld [vmem:[#allocation5 + $0x58] sm:$0xff]   ;;  %v764_v33 = vld [vmem:[#allocation5 + $0x60] sm:$0xff]   ;;  %v120_v57 = vsub.s32 6, %v65_v50  ;;  %v142_v58 = vsub.s32 3, %v65_v50  ;;  %v146_v59 = vsub.s32 7, %v65_v50 }
  0x31   :  { %672 = vmatprep.subr.bf16.mxu1 %v758_v22  ;;  %v735_v30 = vld [vmem:[#allocation2 + $0x94] ss:$8 sps:$4 sm:$0xff]   ;;  %v737_v31 = vld [vmem:[#allocation2 + $0x90] ss:$8 sps:$4 sm:$0xff]   ;;  %v738_v34 = vld [vmem:[#allocation2 + $0xa4] ss:$8 sps:$4 sm:$0xff]  }
  0x32   :  { %707 = vset.pattern.permute.xlu0 %v853_v8  ;;  %v763_v32 = vld [vmem:[#allocation5 + $0x18] sm:$0xff]   ;;  %v765_v35 = vld [vmem:[#allocation5 + $0x20] sm:$0xff]   ;;  %v766_v36 = vld [vmem:[#allocation5 + $0x68] sm:$0xff]  }
  0x33   :  { %389 = vmatpush1.bf16.msra.mxu0 %v716_v10  ;;  %v740_v37 = vld [vmem:[#allocation2 + $0xa0] ss:$8 sps:$4 sm:$0xff]   ;;  %v741_v38 = vld [vmem:[#allocation2 + $0xb4] ss:$8 sps:$4 sm:$0xff]   ;;  %v743_v40 = vld [vmem:[#allocation2 + $0xb0] ss:$8 sps:$4 sm:$0xff]  }
  0x34   :  { %390 = vmatprep.subr.bf16.mxu0 %v717_v11  ;;  %673 = vmatpush3.bf16.msra.mxu1 %v759_v23  ;;  %v767_v39 = vld [vmem:[#allocation5 + $0x28] sm:$0xff]   ;;  %v747_v43 = vld [vmem:[#allocation2 + $0xd4] ss:$8 sps:$4 sm:$0xff]   ;;  %v749_v44 = vld [vmem:[#allocation2 + $0xd0] ss:$8 sps:$4 sm:$0xff]  }
  0x35   :  { %674 = vmatprep.subr.bf16.mxu1 %v760_v24  ;;  %v744_v41 = vld [vmem:[#allocation2 + $0xc4] ss:$8 sps:$4 sm:$0xff]   ;;  %v746_v42 = vld [vmem:[#allocation2 + $0xc0] ss:$8 sps:$4 sm:$0xff]   ;;  %v753_v47 = vld [vmem:[#allocation2 + $0xf4] ss:$8 sps:$4 sm:$0xff]  }
  0x36   :  { %v750_v45 = vld [vmem:[#allocation2 + $0xe4] ss:$8 sps:$4 sm:$0xff]   ;;  %v752_v46 = vld [vmem:[#allocation2 + $0xe0] ss:$8 sps:$4 sm:$0xff]   ;;  %v755_v48 = vld [vmem:[#allocation2 + $0xf0] ss:$8 sps:$4 sm:$0xff]  }
  0x37   :  { %391 = vmatpush1.bf16.msra.mxu0 %v719_v12  ;;  %v57_v55 = vld [vmem:[%s961_s1] sm:$0xff] }
  0x38   :  { %392 = vmatprep.subr.bf16.mxu0 %v720_v13  ;;  %675 = vmatpush3.bf16.msra.mxu1 %v761_v27  ;;  %v67_v60 = vrot.slane %v57_v55, %v922_v51  ;;  %v71_v61 = vrot.slane %v57_v55, %v70_v52  ;;  %v91_v62 = vrot.slane %v57_v55, %v924_v53  ;;  %v162_v22 = vld [vmem:[%s962_s2] sm:$0x3] }
  0x39   :  { %676 = vmatprep.subr.bf16.mxu1 %v762_v28  ;;  %v95_v63 = vrot.slane %v57_v55, %v94_v54  ;;  %v117_v0 = vrot.slane %v57_v55, %v116_v56  ;;  %v121_v1 = vrot.slane %v57_v55, %v120_v57  ;;  %v143_v4 = vrot.slane %v57_v55, %v142_v58 }
  0x3a   :  { %v147_v5 = vrot.slane %v57_v55, %v146_v59  ;;  %v77_v6 = vrot.slane %v67_v60, %v922_v51  ;;  %v81_v7 = vrot.slane %v71_v61, %v922_v51  ;;  %v101_v8 = vrot.slane %v91_v62, %v924_v53  ;;  %v653_v59 = vld [vmem:[%s966_s6] ss:$0 sm:$0xff] }
  0x3b   :  { %393 = vmatpush1.bf16.msra.mxu0 %v722_v14  ;;  %v105_v9 = vrot.slane %v95_v63, %v924_v53  ;;  %v127_v10 = vrot.slane %v117_v0, %v116_v56  ;;  %v131_v11 = vrot.slane %v121_v1, %v116_v56  ;;  %v153_v12 = vrot.slane %v143_v4, %v142_v58 }
  0x3c   :  { %394 = vmatprep.subr.bf16.mxu0 %v723_v15  ;;  %677 = vmatpush3.bf16.msra.mxu1 %v763_v32  ;;  %v157_v13 = vrot.slane %v147_v5, %v142_v58 }
  0x3d   :  { %678 = vmatprep.subr.bf16.mxu1 %v764_v33 }
  0x3f   :  { %395 = vmatpush1.bf16.msra.mxu0 %v725_v16 }
  0x40   :  { %396 = vmatprep.subr.bf16.mxu0 %v726_v17  ;;  %679 = vmatpush3.bf16.msra.mxu1 %v765_v35 }
  0x41   :  { %680 = vmatprep.subr.bf16.mxu1 %v766_v36 }
  0x43   :  { %397 = vmatpush1.bf16.msra.mxu0 %v728_v18 }
  0x44   :  { %398 = vmatprep.subr.bf16.mxu0 %v729_v19  ;;  %681 = vmatpush3.bf16.msra.mxu1 %v767_v39  ;;  %v768_v39 = vld [vmem:[#allocation5 + $0x70] sm:$0xff]  }
  0x45   :  { %682 = vmatprep.subr.bf16.mxu1 %v768_v39 }
  0x47   :  { %399 = vmatpush1.bf16.msra.mxu0 %v731_v25 }
  0x48   :  { %400 = vmatprep.subr.bf16.mxu0 %v732_v26 }
  0x4b   :  { %401 = vmatpush1.bf16.msra.mxu0 %v734_v29  ;;  %v167_v29 = vrot.slane %v162_v22, %v922_v51 }
  0x4c   :  { %402 = vmatprep.subr.bf16.mxu0 %v735_v30  ;;  %v171_v30 = vrot.slane %v162_v22, %v924_v53 }
  0x4f   :  { %403 = vmatpush1.bf16.msra.mxu0 %v737_v31 }
  0x50   :  { %404 = vmatprep.subr.bf16.mxu0 %v738_v34 }
  0x53   :  { %405 = vmatpush1.bf16.msra.mxu0 %v740_v37 }
  0x54   :  { %406 = vmatprep.subr.bf16.mxu0 %v741_v38 }
  0x57   :  { %407 = vmatpush1.bf16.msra.mxu0 %v743_v40  ;;  %v769_v40 = vld [vmem:[#allocation5 + $0x30] sm:$0xff]  }
  0x58   :  { %408 = vmatprep.subr.bf16.mxu0 %v744_v41  ;;  %683 = vmatpush3.bf16.msra.mxu1 %v769_v40  ;;  %v770_v41 = vld [vmem:[#allocation5 + $0x78] sm:$0xff]  }
  0x59   :  { %684 = vmatprep.subr.bf16.mxu1 %v770_v41 }
  0x5b   :  { %409 = vmatpush1.bf16.msra.mxu0 %v746_v42  ;;  %v771_v42 = vld [vmem:[#allocation5 + $0x38] sm:$0xff]  }
  0x5c   :  { %410 = vmatprep.subr.bf16.mxu0 %v747_v43  ;;  %685 = vmatpush3.bf16.msra.mxu1 %v771_v42  ;;  %v212_v43 = vld [vmem:[%s964_s4] sm:$0x3]  ;;  %s854_s4 = smov [#allocation7]  }
  0x5d   :  { %s611_s11 = sshll.u32 %s854_s4, 4  ;;  %s612_s11 = int_to_ptr.vmem [resolvable:$true] %s611_s11 }
  0x5e   :  { %s816_s12 = scalar_lea.vmem %s612_s11, 128  ;;  %p821_p3 = scmp.lt.s32.totalorder %s612_s11, %s612_s11 }
  0x5f   :  { %411 = vmatpush1.bf16.msra.mxu0 %v749_v44  ;;  %v217_v44 = vrot.slane %v212_v43, %v922_v51  ;;  %p817_p2 = scmp.ne.s32.totalorder %s612_s11, %s816_s12  ;;  %p822_p4 = scmp.lt.s32.totalorder %s816_s12, %s816_s12 }
  0x60   :  { %412 = vmatprep.subr.bf16.mxu0 %v750_v45  ;;  %v221_v45 = vrot.slane %v212_v43, %v924_v53 }
  0x61   :  { %p823_p5 = por %p822_p4, %p821_p3 }
  0x63   :  { %413 = vmatpush1.bf16.msra.mxu0 %v752_v46  ;;  %p824_p6 = pnand %p823_p5, %p817_p2 }
  0x64   :  { %414 = vmatprep.subr.bf16.mxu0 %v753_v47 }
  0x67   :  { %415 = vmatpush1.bf16.msra.mxu0 %v755_v48 }
  0xa8   :  { %v61_v2 = vpop.permute.xlu0 %60  ;;  %v112_v3 = vpop.permute.xlu1 %111 }
  0xa9   :  { %v82_v16 = vmul.f32 %v77_v6, %v61_v2  ;;  %v83_v17 = vmul.f32 %v81_v7, %v61_v2  ;;  %v132_v20 = vmul.f32 %v127_v10, %v112_v3  ;;  %v133_v21 = vmul.f32 %v131_v11, %v112_v3 }
  0xad   :  { %v86_v14 = vpop.permute.xlu0 %85  ;;  %v138_v15 = vpop.permute.xlu1 %137 }
  0xae   :  { %v106_v18 = vmul.f32 %v101_v8, %v86_v14  ;;  %v107_v19 = vmul.f32 %v105_v9, %v86_v14  ;;  %v158_v25 = vmul.f32 %v153_v12, %v138_v15  ;;  %v159_v26 = vmul.f32 %v157_v13, %v138_v15 }
  0xb0   :  { %v108_v23 = vadd.f32 %v106_v18, %v82_v16  ;;  %v109_v24 = vadd.f32 %v107_v19, %v83_v17 }
  0xb2   :  { %v134_v27 = vadd.f32 %v132_v20, %v108_v23  ;;  %v135_v28 = vadd.f32 %v133_v21, %v109_v24 }
  0xb4   :  { %v160_v31 = vadd.f32 %v158_v25, %v134_v27  ;;  %v161_v32 = vadd.f32 %v159_v26, %v135_v28 }
  0xb6   :  { %v175_v33 = vadd.f32 %v171_v30, %v161_v32  ;;  %v174_v34 = vadd.f32 %v167_v29, %v160_v31 }
  0xb8   :  { %v177_v35 = vmax.f32 %v175_v33, 0.0  ;;  %v176_v36 = vmax.f32 %v174_v34, 0.0 }
  0xba   :  { %v179_v37 = vpack.c.bf16 %v177_v35, %v177_v35  ;;  %v178_v38 = vpack.c.bf16 %v176_v36, %v176_v36 }
  0xbc   :  { %416 = vmatprep.mubr.bf16.mxu0 %v179_v37 }
  0xbd   :  { %417 = vmatmul.mubr.bf16.vlgmr.msra.gmra.mrb[0].mxu0 %v178_v38 }
 0x190   :  { %v418_v46 = vpop.f32.mrb[0].mxu0 }
 0x191   :  { %v419_v47 = vadd.f32 %v418_v46, %v217_v44  ;;  %v420_v48 = vpop.f32.mrb[1].mxu0 }
 0x192   :  { %v421_v49 = vadd.f32 %v420_v48, %v221_v45  ;;  %v422_v50 = vpop.f32.mrb[2].mxu0 }
 0x193   :  { %v425_v52 = vmax.f32 %v419_v47, 0.0  ;;  %v423_v54 = vpop.f32.mrb[3].mxu0 }
 0x194   :  { %v426_v55 = vmax.f32 %v421_v49, 0.0 }
 0x195   :  { %v427_v57 = vpack.c.bf16 %v425_v52, %v425_v52 }
 0x196   :  { %v428_v56 = vpack.c.bf16 %v426_v55, %v426_v55 }
 0x198   :  { %596 = vmatprep.mubr.bf16.mxu1 %v428_v56 }
 0x199   :  { %597 = vmatmul.mubr.bf16.vlgmr.msra.gmra.mrb[0].mxu1 %v427_v57 }
 0x26c   :  { %v686_v58 = vpop.f32.mrb[0].mxu1 }
 0x26d   :  { %v687_v51 = vpop.f32.mrb[1].mxu1 }
 0x26e   :  { %v688_v53 = vadd.f32 %v687_v51, %v686_v58  ;;  %v689_v60 = vpop.f32.mrb[2].mxu1 }
 0x26f   :  { %v690_v61 = vpop.f32.mrb[3].mxu1 }
 0x270   :  { %v599_v62 = vadd.f32 %v688_v53, %v653_v59 }
 0x272   :  { %604 = vst [vmem:[#allocation7] sm:$0xff] %v599_v62 }
 0x273   :  { %827 = shalt.err (!%p824_p6)
}
 0x274   :  { %s828_s6 = scalar_lea.hbm %s967_s7, 128 }
 0x275   :  { %p829_p7 = scmp.ne.s32.totalorder %s967_s7, %s828_s6  ;;  %p832_p8 = scmp.lt.u32.totalorder %s828_s6, %s967_s7 }
 0x277   :  { %p834_p9 = pnand %p832_p8, %p829_p7 }
 0x279   :  { %837 = shalt.err (!%p834_p9)
}
 0x27a   :  { %614 = dma.vmem_to_hbm [thread:$0]  %s612_s11, 128, %s967_s7, [#allocation4]  }
 0x27b   :  { %842 = dma.done.wait [#allocation4], 128  }
 0x27c   :  { %843 = vsyncadd [#allocation4], 4294967168 }
 0x27d   :  { %618 = vsyncpa [#allocation3], 1 }
 0x27e   :  { %619 = vsyncpa [#allocation6], 1 }
 0x27f   :  { %620 = vsyncpa [#allocation4], 1 }

</bundles_post_ra>
